<compile_context>
chip_gen: v7x
topology: tpu7x:2x2x1
jax: 0.10.0
libtpu: 0.0.40
codegen_flags: <defaults>
</compile_context>

<pallas_src>
import functools

import jax
import jax.numpy as jnp
from jax.experimental import pallas as pl
from jax.experimental.pallas import tpu as pltpu


def _round_up(x, m):
    return ((x + m - 1) // m) * m


# ----------------------------------------------------------------------------
# Fused Pallas kernel: in-edges + out-edges + self-loop + tanh combine
# ----------------------------------------------------------------------------
def _fused_kernel(x_node_ref, loop_rel_ref, w_loop_ref,
                  heads_ref, norms_ref, xt_ref, rel_ref, w_ref,
                  o_ref, acc_ref, *, comp_type, n_tile, e_tile):
    m = pl.program_id(1)          # mode axis: 0 = in-edges, 1 = out-edges
    e = pl.program_id(2)          # edge-tile axis (reduction)

    def comp(a, b):
        if comp_type == 'sub':
            return a - b
        return a * b              # 'mul'

    # ---- init (first reduction step): self-loop message for this node tile
    #      (head == tail == node id, norm == 1 -> no gather / no scatter).
    @pl.when(jnp.logical_and(m == 0, e == 0))
    def _():
        lm = comp(x_node_ref[...], loop_rel_ref[...])            # (Nt, Din_p)
        acc_ref[...] = jnp.dot(lm.astype(jnp.bfloat16),
                               w_loop_ref[...].astype(jnp.bfloat16),
                               preferred_element_type=jnp.float32)

    # ---- per-edge messages: comp(x[tail], rel[type]) @ W_mode  (bf16 MXU)
    msg = comp(xt_ref[0], rel_ref[0])                            # (Et, Din_p)
    msg = jnp.dot(msg.astype(jnp.bfloat16),
                  w_ref[0].astype(jnp.bfloat16),
                  preferred_element_type=jnp.float32)            # (Et, Dout_p)

    # ---- scatter-sum over head indices as an in-kernel one-hot matmul,
    #      with the per-edge norm folded into the mask (kept in f32).
    node_ids = (pl.program_id(0) * n_tile
                + jax.lax.broadcasted_iota(jnp.int32, (n_tile, e_tile), 0))
    hit = (node_ids == heads_ref[0]).astype(jnp.float32)         # (Nt, Et)
    scat = hit * norms_ref[0]                                    # norm-weighted
    acc_ref[...] += jnp.dot(scat, msg, preferred_element_type=jnp.float32)

    # ---- finalize (last reduction step): combine + tanh, write output tile
    @pl.when(jnp.logical_and(m == pl.num_programs(1) - 1,
                             e == pl.num_programs(2) - 1))
    def _():
        o_ref[...] = jnp.tanh(acc_ref[...] * (1.0 / 3.0))


def fused_message_pass(x_p, loop_rel_p, w_loop_p, heads, norms,
                       xt_stack, rel_stack, w_stack, *,
                       comp_type, n_tile, e_tile):
    n_pad, din_p = x_p.shape
    dout_p = w_loop_p.shape[1]
    e_pad = heads.shape[-1]
    grid = (n_pad // n_tile, 2, e_pad // e_tile)
    kernel = functools.partial(_fused_kernel, comp_type=comp_type,
                               n_tile=n_tile, e_tile=e_tile)
    return pl.pallas_call(
        kernel,
        grid=grid,
        out_shape=jax.ShapeDtypeStruct((n_pad, dout_p), jnp.float32),
        in_specs=[
            pl.BlockSpec((n_tile, din_p), lambda n, m, e: (n, 0)),        # x node tile
            pl.BlockSpec((1, din_p), lambda n, m, e: (0, 0)),             # loop_rel
            pl.BlockSpec((din_p, dout_p), lambda n, m, e: (0, 0)),        # w_loop
            pl.BlockSpec((1, 1, e_tile), lambda n, m, e: (m, 0, e)),      # head idx
            pl.BlockSpec((1, 1, e_tile), lambda n, m, e: (m, 0, e)),      # edge norm
            pl.BlockSpec((1, e_tile, din_p), lambda n, m, e: (m, e, 0)),  # x[tail]
            pl.BlockSpec((1, e_tile, din_p), lambda n, m, e: (m, e, 0)),  # rel[type]
            pl.BlockSpec((1, din_p, dout_p), lambda n, m, e: (m, 0, 0)),  # w_mode
        ],
        out_specs=pl.BlockSpec((n_tile, dout_p), lambda n, m, e: (n, 0)),
        scratch_shapes=[pltpu.VMEM((n_tile, dout_p), jnp.float32)],
        compiler_params=pltpu.CompilerParams(
            dimension_semantics=("parallel", "arbitrary", "arbitrary"),
            vmem_limit_bytes=32 * 1024 * 1024),
    )(x_p, loop_rel_p, w_loop_p, heads, norms, xt_stack, rel_stack, w_stack)


# ----------------------------------------------------------------------------
# JAX glue (normalization, padding, gathers) + forward pass
# ----------------------------------------------------------------------------
def _normalization(head, tail, num_nodes):
    # degree^-0.5[head] * 1 * degree^-0.5[tail], inf -> 0 (matches torch).
    edge_weight = jnp.ones_like(head, dtype=jnp.float32)
    degree = jax.ops.segment_sum(edge_weight, head, num_segments=num_nodes)
    degree_inv = jnp.power(degree, -0.5)
    degree_inv = jnp.where(jnp.isinf(degree_inv), 0.0, degree_inv)
    return degree_inv[head] * edge_weight * degree_inv[tail]


def _prep_edges(x_p, rel_emb_p, head, tail, etype, norm, e_pad):
    # TODO(synk): the row gathers below stay in the XLA wrapper; an in-kernel
    # DMA gather (memory_space=pl.ANY + prefetched tail indices) would avoid
    # materializing the (E, Din) copies in HBM.
    E = head.shape[0]
    x_tail = jnp.take(x_p, tail, axis=0)
    rel_e = jnp.take(rel_emb_p, etype, axis=0)
    pad = e_pad - E
    x_tail = jnp.pad(x_tail, ((0, pad), (0, 0)))
    rel_e = jnp.pad(rel_e, ((0, pad), (0, 0)))
    head_p = jnp.pad(head.astype(jnp.int32), (0, pad), constant_values=-1)
    norm_p = jnp.pad(norm.astype(jnp.float32), (0, pad))        # padded edges: 0
    return x_tail, rel_e, head_p, norm_p


def comp_gcn_basis_forward(params, nodes_features, edge_index, edge_type,
                           comp_type='sub', n_tile=8, e_tile=128):
    if comp_type not in ('sub', 'mul'):
        # TODO(synk): comp_type='corr' (circular correlation via FFT) has no
        # clean in-kernel Pallas equivalent; not implemented.
        raise NotImplementedError("comp_type 'corr' not implemented")

    N, Din = nodes_features.shape
    Dout = params['w_in'].shape[1]
    num_edges = edge_index.shape[1] // 2

    # Tiny matmuls in plain XLA (Pallas launch + (8,128) padding >> the work).
    rel_emb = params['rel_weight'] @ params['basis_vector']
    rel_emb = jnp.concatenate([rel_emb, params['loop_rel']], axis=0)   # (R+1, Din)
    out_2 = rel_emb @ params['weight_rel']

    # Lane-dense padding: channels -> x128, nodes -> n_tile, edges -> e_tile.
    din_p = _round_up(Din, 128)
    dout_p = _round_up(Dout, 128)
    n_pad = _round_up(N, n_tile)
    e_pad = _round_up(max(num_edges, 1), e_tile)

    x_p = jnp.pad(nodes_features.astype(jnp.float32),
                  ((0, n_pad - N), (0, din_p - Din)))
    rel_emb_p = jnp.pad(rel_emb.astype(jnp.float32), ((0, 0), (0, din_p - Din)))
    loop_rel_p = rel_emb_p[-1:, :]                                     # (1, Din_p)

    def pad_w(w):
        return jnp.pad(w.astype(jnp.float32),
                       ((0, din_p - Din), (0, dout_p - Dout)))

    w_loop_p = pad_w(params['w_loop'])
    w_stack = jnp.stack([pad_w(params['w_in']), pad_w(params['w_out'])], axis=0)

    in_index, out_index = edge_index[:, :num_edges], edge_index[:, num_edges:]
    in_type, out_type = edge_type[:num_edges], edge_type[num_edges:]
    in_norm = _normalization(in_index[0], in_index[1], N)
    out_norm = _normalization(out_index[0], out_index[1], N)

    xt_in, rel_in, head_in, norm_in = _prep_edges(
        x_p, rel_emb_p, in_index[0], in_index[1], in_type, in_norm, e_pad)
    xt_out, rel_out, head_out, norm_out = _prep_edges(
        x_p, rel_emb_p, out_index[0], out_index[1], out_type, out_norm, e_pad)

    xt_stack = jnp.stack([xt_in, xt_out], axis=0)                  # (2,E_pad,Din_p)
    rel_stack = jnp.stack([rel_in, rel_out], axis=0)               # (2,E_pad,Din_p)
    heads = jnp.stack([head_in, head_out], axis=0)[:, None, :]     # (2,1,E_pad) i32
    norms = jnp.stack([norm_in, norm_out], axis=0)[:, None, :]     # (2,1,E_pad) f32

    out_p = fused_message_pass(x_p, loop_rel_p, w_loop_p, heads, norms,
                               xt_stack, rel_stack, w_stack,
                               comp_type=comp_type, n_tile=n_tile, e_tile=e_tile)

    # nn.Dropout(0.2) is eval-mode identity; /3 + tanh are fused in-kernel.
    return out_p[:N, :Dout], out_2


# ----------------------------------------------------------------------------
# Pure-JAX reference (for correctness check only)
# ----------------------------------------------------------------------------
def _reference_forward(params, x, edge_index, edge_type, comp_type='sub'):
    N = x.shape[0]
    E = edge_index.shape[1] // 2
    rel_emb = params['rel_weight'] @ params['basis_vector']
    rel_emb = jnp.concatenate([rel_emb, params['loop_rel']], axis=0)

    def prop(index, etype, norm, w):
        head, tail = index[0], index[1]
        if comp_type == 'sub':
            c = x[tail] - rel_emb[etype]
        else:
            c = x[tail] * rel_emb[etype]
        msg = c @ w
        if norm is not None:
            msg = msg * norm[:, None]
        return jax.ops.segment_sum(msg, head, num_segments=N)

    in_i, out_i = edge_index[:, :E], edge_index[:, E:]
    in_t, out_t = edge_type[:E], edge_type[E:]
    loop_i = jnp.stack([jnp.arange(N), jnp.arange(N)])
    loop_t = jnp.full((N,), rel_emb.shape[0] - 1, dtype=jnp.int32)
    a = prop(in_i, in_t, _normalization(in_i[0], in_i[1], N), params['w_in'])
    b = prop(out_i, out_t, _normalization(out_i[0], out_i[1], N), params['w_out'])
    c = prop(loop_i, loop_t, None, params['w_loop'])
    return jnp.tanh((a + b + c) / 3.0), rel_emb @ params['weight_rel']


# ----------------------------------------------------------------------------
# Deterministic parameter init + demo run
# ----------------------------------------------------------------------------
def _xavier(key, shape):
    fan_in, fan_out = shape[0], shape[1]
    std = (2.0 / (fan_in + fan_out)) ** 0.5
    return std * jax.random.normal(key, shape, dtype=jnp.float32)


if __name__ == "__main__":
    key = jax.random.PRNGKey(0)
    in_channels, out_channels = 32, 32
    num_relations, num_basis = 5, 3
    num_nodes, num_dir_edges = 16, 20

    ks = jax.random.split(key, 12)
    params = {
        'basis_vector': _xavier(ks[0], (num_basis, in_channels)),
        'rel_weight':   _xavier(ks[1], (num_relations, num_basis)),
        'weight_rel':   _xavier(ks[2], (in_channels, out_channels)),
        'loop_rel':     _xavier(ks[3], (1, in_channels)),
        'w_in':         _xavier(ks[4], (in_channels, out_channels)),
        'w_out':        _xavier(ks[5], (in_channels, out_channels)),
        'w_loop':       _xavier(ks[6], (in_channels, out_channels)),
    }

    nodes_features = jax.random.normal(ks[7], (num_nodes, in_channels),
                                       dtype=jnp.float32)
    src = jax.random.randint(ks[8], (num_dir_edges,), 0, num_nodes)
    dst = jax.random.randint(ks[9], (num_dir_edges,), 0, num_nodes)
    # forward edges followed by inverse edges, as CompGCN expects (2, 2E)
    edge_index = jnp.concatenate(
        [jnp.stack([src, dst]), jnp.stack([dst, src])], axis=1).astype(jnp.int32)
    etype_fwd = jax.random.randint(ks[10], (num_dir_edges,), 0, num_relations)
    etype_bwd = jax.random.randint(ks[11], (num_dir_edges,), 0, num_relations)
    edge_type = jnp.concatenate([etype_fwd, etype_bwd]).astype(jnp.int32)

    out, out_2 = comp_gcn_basis_forward(params, nodes_features, edge_index,
                                        edge_type, comp_type='sub')
    jax.block_until_ready((out, out_2))

    ref_out, ref_out2 = _reference_forward(params, nodes_features, edge_index,
                                           edge_type, comp_type='sub')
    assert out.shape == (num_nodes, out_channels)
    assert out_2.shape == (num_relations + 1, out_channels)
    assert float(jnp.max(jnp.abs(out - ref_out))) < 5e-2        # bf16 MXU rounding
    assert float(jnp.max(jnp.abs(out_2 - ref_out2))) < 1e-5
    print("KERNEL_OK")
</pallas_src>

<mosaic_0001>
module attributes {stable_mosaic.version = 11 : i64} {
  func.func @_fused_kernel(%arg0: i32, %arg1: i32, %arg2: i32, %arg3: memref<8x128xf32, #tpu.memory_space<vmem>>, %arg4: memref<1x128xf32, #tpu.memory_space<vmem>>, %arg5: memref<128x128xf32, #tpu.memory_space<vmem>>, %arg6: memref<1x1x128xi32, #tpu.memory_space<vmem>>, %arg7: memref<1x1x128xf32, #tpu.memory_space<vmem>>, %arg8: memref<1x128x128xf32, #tpu.memory_space<vmem>>, %arg9: memref<1x128x128xf32, #tpu.memory_space<vmem>>, %arg10: memref<1x128x128xf32, #tpu.memory_space<vmem>>, %arg11: memref<8x128xf32, #tpu.memory_space<vmem>>, %arg12: memref<8x128xf32, #tpu.memory_space<vmem>>) attributes {dimension_semantics = [#tpu.dimension_semantics<parallel>, #tpu.dimension_semantics<arbitrary>, #tpu.dimension_semantics<arbitrary>], iteration_bounds = array<i64: 2, 2, 1>, scalar_prefetch = 0 : i64, scratch_operands = 1 : i64, tpu.core_type = #tpu.core_type<tc>, window_params = [{transform_indices = @transform_0, window_bounds = array<i64: 8, 128>}, {pipeline_mode = #tpu.pipeline_mode<synchronous>, transform_indices = @transform_1, window_bounds = array<i64: 1, 128>}, {pipeline_mode = #tpu.pipeline_mode<synchronous>, transform_indices = @transform_2, window_bounds = array<i64: 128, 128>}, {transform_indices = @transform_3, window_bounds = array<i64: 1, 1, 128>}, {transform_indices = @transform_4, window_bounds = array<i64: 1, 1, 128>}, {transform_indices = @transform_5, window_bounds = array<i64: 1, 128, 128>}, {transform_indices = @transform_6, window_bounds = array<i64: 1, 128, 128>}, {transform_indices = @transform_7, window_bounds = array<i64: 1, 128, 128>}, {transform_indices = @transform_8, window_bounds = array<i64: 8, 128>}]} {
    %c0_i32 = arith.constant 0 : i32
    %0 = arith.cmpi eq, %arg1, %c0_i32 : i32
    %c0_i32_0 = arith.constant 0 : i32
    %1 = arith.cmpi eq, %arg2, %c0_i32_0 : i32
    %2 = arith.andi %0, %1 : i1
    %3 = arith.extui %2 : i1 to i32
    %c0_i32_1 = arith.constant 0 : i32
    %4 = arith.cmpi ne, %3, %c0_i32_1 : i32
    scf.if %4 {
      %c0_23 = arith.constant 0 : index
      %c0_24 = arith.constant 0 : index
      %38 = vector.load %arg3[%c0_23, %c0_24] : memref<8x128xf32, #tpu.memory_space<vmem>>, vector<8x128xf32>
      %c0_25 = arith.constant 0 : index
      %c0_26 = arith.constant 0 : index
      %39 = vector.load %arg4[%c0_25, %c0_26] : memref<1x128xf32, #tpu.memory_space<vmem>>, vector<1x128xf32>
      %40 = vector.broadcast %39 : vector<1x128xf32> to vector<8x128xf32>
      %41 = arith.subf %38, %40 : vector<8x128xf32>
      %42 = arith.truncf %41 : vector<8x128xf32> to vector<8x128xbf16>
      %c0_27 = arith.constant 0 : index
      %c0_28 = arith.constant 0 : index
      %43 = vector.load %arg5[%c0_27, %c0_28] : memref<128x128xf32, #tpu.memory_space<vmem>>, vector<128x128xf32>
      %44 = arith.truncf %43 : vector<128x128xf32> to vector<128x128xbf16>
      %cst_29 = arith.constant dense<0.000000e+00> : vector<8x128xf32>
      %45 = tpu.matmul %42, %44, %cst_29 {dimension_numbers = #tpu.dot_dimension_numbers<[1], [0], [0], [1], [0, 0, 1, 1], [], []>} : vector<8x128xbf16>, vector<128x128xbf16>, vector<8x128xf32> -> vector<8x128xf32>
      %c0_30 = arith.constant 0 : index
      %c0_31 = arith.constant 0 : index
      %46 = vector.load %arg12[%c0_30, %c0_31] : memref<8x128xf32, #tpu.memory_space<vmem>>, vector<8x128xf32>
      tpu.vector_store %arg12[%c0_30, %c0_31], %45 {strides = array<i32>} : memref<8x128xf32, #tpu.memory_space<vmem>>, vector<8x128xf32>,
    } else {
    }
    %c0 = arith.constant 0 : index
    %c0_2 = arith.constant 0 : index
    %c0_3 = arith.constant 0 : index
    %5 = vector.load %arg8[%c0, %c0_2, %c0_3] : memref<1x128x128xf32, #tpu.memory_space<vmem>>, vector<1x128x128xf32>
    %6 = vector.shape_cast %5 : vector<1x128x128xf32> to vector<128x128xf32>
    %c0_4 = arith.constant 0 : index
    %c0_5 = arith.constant 0 : index
    %c0_6 = arith.constant 0 : index
    %7 = vector.load %arg9[%c0_4, %c0_5, %c0_6] : memref<1x128x128xf32, #tpu.memory_space<vmem>>, vector<1x128x128xf32>
    %8 = vector.shape_cast %7 : vector<1x128x128xf32> to vector<128x128xf32>
    %9 = arith.subf %6, %8 : vector<128x128xf32>
    %10 = arith.truncf %9 : vector<128x128xf32> to vector<128x128xbf16>
    %c0_7 = arith.constant 0 : index
    %c0_8 = arith.constant 0 : index
    %c0_9 = arith.constant 0 : index
    %11 = vector.load %arg10[%c0_7, %c0_8, %c0_9] : memref<1x128x128xf32, #tpu.memory_space<vmem>>, vector<1x128x128xf32>
    %12 = vector.shape_cast %11 : vector<1x128x128xf32> to vector<128x128xf32>
    %13 = arith.truncf %12 : vector<128x128xf32> to vector<128x128xbf16>
    %cst = arith.constant dense<0.000000e+00> : vector<128x128xf32>
    %14 = tpu.matmul %10, %13, %cst {dimension_numbers = #tpu.dot_dimension_numbers<[1], [0], [0], [1], [0, 0, 1, 1], [], []>} : vector<128x128xbf16>, vector<128x128xbf16>, vector<128x128xf32> -> vector<128x128xf32>
    %c8_i32 = arith.constant 8 : i32
    %15 = arith.muli %arg0, %c8_i32 : i32
    %16 = tpu.iota {dimensions = array<i32: 0>} : vector<8x128xi32>
    %17 = vector.broadcast %15 : i32 to vector<8x128xi32>
    %18 = arith.addi %17, %16 : vector<8x128xi32>
    %c0_10 = arith.constant 0 : index
    %c0_11 = arith.constant 0 : index
    %c0_12 = arith.constant 0 : index
    %19 = vector.load %arg6[%c0_10, %c0_11, %c0_12] : memref<1x1x128xi32, #tpu.memory_space<vmem>>, vector<1x1x128xi32>
    %20 = vector.shape_cast %19 : vector<1x1x128xi32> to vector<1x128xi32>
    %21 = vector.broadcast %20 : vector<1x128xi32> to vector<8x128xi32>
    %22 = arith.cmpi eq, %18, %21 : vector<8x128xi32>
    %23 = arith.extui %22 : vector<8x128xi1> to vector<8x128xi32>
    %24 = arith.sitofp %23 : vector<8x128xi32> to vector<8x128xf32>
    %c0_13 = arith.constant 0 : index
    %c0_14 = arith.constant 0 : index
    %c0_15 = arith.constant 0 : index
    %25 = vector.load %arg7[%c0_13, %c0_14, %c0_15] : memref<1x1x128xf32, #tpu.memory_space<vmem>>, vector<1x1x128xf32>
    %26 = vector.shape_cast %25 : vector<1x1x128xf32> to vector<1x128xf32>
    %27 = vector.broadcast %26 : vector<1x128xf32> to vector<8x128xf32>
    %28 = arith.mulf %24, %27 : vector<8x128xf32>
    %c0_16 = arith.constant 0 : index
    %c0_17 = arith.constant 0 : index
    %29 = vector.load %arg12[%c0_16, %c0_17] : memref<8x128xf32, #tpu.memory_space<vmem>>, vector<8x128xf32>
    %cst_18 = arith.constant dense<0.000000e+00> : vector<8x128xf32>
    %30 = tpu.matmul %28, %14, %cst_18 {dimension_numbers = #tpu.dot_dimension_numbers<[1], [0], [0], [1], [0, 0, 1, 1], [], []>} : vector<8x128xf32>, vector<128x128xf32>, vector<8x128xf32> -> vector<8x128xf32>
    %31 = arith.addf %29, %30 : vector<8x128xf32>
    %c0_19 = arith.constant 0 : index
    %c0_20 = arith.constant 0 : index
    %32 = vector.load %arg12[%c0_19, %c0_20] : memref<8x128xf32, #tpu.memory_space<vmem>>, vector<8x128xf32>
    tpu.vector_store %arg12[%c0_19, %c0_20], %31 {strides = array<i32>} : memref<8x128xf32, #tpu.memory_space<vmem>>, vector<8x128xf32>,
    %c1_i32 = arith.constant 1 : i32
    %33 = arith.cmpi eq, %arg1, %c1_i32 : i32
    %c0_i32_21 = arith.constant 0 : i32
    %34 = arith.cmpi eq, %arg2, %c0_i32_21 : i32
    %35 = arith.andi %33, %34 : i1
    %36 = arith.extui %35 : i1 to i32
    %c0_i32_22 = arith.constant 0 : i32
    %37 = arith.cmpi ne, %36, %c0_i32_22 : i32
    scf.if %37 {
      %c0_23 = arith.constant 0 : index
      %c0_24 = arith.constant 0 : index
      %38 = vector.load %arg12[%c0_23, %c0_24] : memref<8x128xf32, #tpu.memory_space<vmem>>, vector<8x128xf32>
      %cst_25 = arith.constant 0.333333343 : f32
      %39 = vector.broadcast %cst_25 : f32 to vector<8x128xf32>
      %40 = arith.mulf %38, %39 : vector<8x128xf32>
      %41 = math.tanh %40 : vector<8x128xf32>
      %c0_26 = arith.constant 0 : index
      %c0_27 = arith.constant 0 : index
      %42 = vector.load %arg11[%c0_26, %c0_27] : memref<8x128xf32, #tpu.memory_space<vmem>>, vector<8x128xf32>
      tpu.vector_store %arg11[%c0_26, %c0_27], %41 {strides = array<i32>} : memref<8x128xf32, #tpu.memory_space<vmem>>, vector<8x128xf32>,
    } else {
    }
    return
  }
  func.func @transform_0(%arg0: i32, %arg1: i32, %arg2: i32) -> (i32, i32) {
    %c0_i32 = arith.constant 0 : i32
    %c0_i32_0 = arith.constant 0 : i32
    return %arg0, %c0_i32 : i32, i32
  }
  func.func @transform_1(%arg0: i32, %arg1: i32, %arg2: i32) -> (i32, i32) {
    %c0_i32 = arith.constant 0 : i32
    %c0_i32_0 = arith.constant 0 : i32
    %c0_i32_1 = arith.constant 0 : i32
    return %c0_i32, %c0_i32_0 : i32, i32
  }
  func.func @transform_2(%arg0: i32, %arg1: i32, %arg2: i32) -> (i32, i32) {
    %c0_i32 = arith.constant 0 : i32
    %c0_i32_0 = arith.constant 0 : i32
    %c0_i32_1 = arith.constant 0 : i32
    return %c0_i32, %c0_i32_0 : i32, i32
  }
  func.func @transform_3(%arg0: i32, %arg1: i32, %arg2: i32) -> (i32, i32, i32) {
    %c0_i32 = arith.constant 0 : i32
    %c0_i32_0 = arith.constant 0 : i32
    return %arg1, %c0_i32, %arg2 : i32, i32, i32
  }
  func.func @transform_4(%arg0: i32, %arg1: i32, %arg2: i32) -> (i32, i32, i32) {
    %c0_i32 = arith.constant 0 : i32
    %c0_i32_0 = arith.constant 0 : i32
    return %arg1, %c0_i32, %arg2 : i32, i32, i32
  }
  func.func @transform_5(%arg0: i32, %arg1: i32, %arg2: i32) -> (i32, i32, i32) {
    %c0_i32 = arith.constant 0 : i32
    %c0_i32_0 = arith.constant 0 : i32
    return %arg1, %arg2, %c0_i32 : i32, i32, i32
  }
  func.func @transform_6(%arg0: i32, %arg1: i32, %arg2: i32) -> (i32, i32, i32) {
    %c0_i32 = arith.constant 0 : i32
    %c0_i32_0 = arith.constant 0 : i32
    return %arg1, %arg2, %c0_i32 : i32, i32, i32
  }
  func.func @transform_7(%arg0: i32, %arg1: i32, %arg2: i32) -> (i32, i32, i32) {
    %c0_i32 = arith.constant 0 : i32
    %c0_i32_0 = arith.constant 0 : i32
    %c0_i32_1 = arith.constant 0 : i32
    return %arg1, %c0_i32, %c0_i32_0 : i32, i32, i32
  }
  func.func @transform_8(%arg0: i32, %arg1: i32, %arg2: i32) -> (i32, i32) {
    %c0_i32 = arith.constant 0 : i32
    %c0_i32_0 = arith.constant 0 : i32
    return %arg0, %c0_i32 : i32, i32
  }
}

</mosaic_0001>

<bundles_post_ra>
// kernel: tpu_custom_call.1
= control target key start
LH: loop header
LB: loop body
LE: loop exit
PB: predicated region body
PF: predicated region fallthrough
CT: control target
= control target key end

     0   :  { %s2267_s0 = inlined_call_operand.hbm [shape: f32[16,128], index: 0, kind: input, shape index: {}]   ;;  %s2268_s1 = inlined_call_operand.vmem [shape: f32[1,128], index: 1, kind: input, shape index: {}]   ;;  %s2269_s2 = inlined_call_operand.hbm [shape: f32[128,128], index: 2, kind: input, shape index: {}]   ;;  %s2270_s3 = inlined_call_operand.vmem [shape: s32[2,1,128], index: 3, kind: input, shape index: {}]   ;;  %s2271_s4 = inlined_call_operand.vmem [shape: f32[2,1,128], index: 4, kind: input, shape index: {}]   ;;  %s2272_s5 = inlined_call_operand.hbm [shape: f32[2,128,128], index: 5, kind: input, shape index: {}]   ;;  %s2273_s6 = inlined_call_operand.hbm [shape: f32[2,128,128], index: 6, kind: input, shape index: {}]   ;;  %s2274_s7 = inlined_call_operand.hbm [shape: f32[2,128,128], index: 7, kind: input, shape index: {}]   ;;  %s2275_s8 = inlined_call_operand.hbm [shape: f32[16,128], index: 8, kind: output, shape index: {}]  }
   0x1   :  { %2293 = sst [smem:[#allocation26_spill]] %s2267_s0 }
   0x2   :  { %2294 = sst [smem:[#allocation27_spill]] %s2268_s1 }
   0x3   :  { %2295 = sst [smem:[#allocation28_spill]] %s2272_s5 }
   0x4   :  { %2296 = sst [smem:[#allocation29_spill]] %s2275_s8 }
   0x5   :  { %13 = vsyncpa [#allocation4], 0 }
   0x6   :  { %15 = vsyncpa [#allocation4 + $0x1], 0 }
   0x7   :  { %16 = vsyncpa [#allocation7], 0 }
   0x8   :  { %17 = vsyncpa [#allocation5], 0 }
   0x9   :  { %19 = vsyncpa [#allocation5 + $0x1], 0  ;;  %s1753_s27 = smov 0   ;;  %s1755_s28 = smov 0  }
   0xa   :  { %s1757_s29 = smov 0   ;;  %s1759_s30 = smov 0  }
   0xb   :  { %s1761_s9 = smov 0   ;;  %s1763_s10 = smov 0  }
   0xc   :  { %s1765_s11 = smov 0   ;;  %s1767_s12 = smov 0  }
   0xd   :  { %s1769_s13 = smov 0   ;;  %s1771_s14 = smov 0  }
   0xe   :  { %s1773_s15 = smov 0  }
   0xf LB: > { %2297 = sst [smem:[#allocation16_spill]] %s1661_s29  ;;  %s1809_s16 = sadd.s32 4294967295, %s1693_s15   ;;  %s1693_s15 = sphi %s1773_s15, %s25_s15   ;;  %s1689_s14 = sphi %s1771_s14, %s2344_s14   ;;  %s1685_s13 = sphi %s1769_s13, %s2343_s13   ;;  %s1681_s12 = sphi %s1767_s12, %s2342_s12   ;;  %s1677_s11 = sphi %s1765_s11, %s2341_s11   ;;  %s1673_s10 = sphi %s1763_s10, %s2340_s10   ;;  %s1669_s9 = sphi %s1761_s9, %s2348_s9   ;;  %s1665_s30 = sphi %s1759_s30, %s2347_s30   ;;  %s1661_s29 = sphi %s1757_s29, %s2338_s29   ;;  %s1657_s28 = sphi %s1755_s28, %s2346_s28   ;;  %s1653_s27 = sphi %s1753_s27, %s2345_s27  }
  0x10   : > { %2298 = sst [smem:[#allocation17_spill]] %s1673_s10  ;;  %s1087_s17 = sadd.s32 4294967294, %s1693_s15  }
  0x11   : > { %2299 = sst [smem:[#allocation18_spill]] %s1681_s12  ;;  %s40_s18 = sadd.s32 1, %s1685_s13 }
  0x12   : > { %2300 = sst [smem:[#allocation19_spill]] %s1685_s13  ;;  %s44_s19 = sadd.s32 1, %s1689_s14 }
  0x13   : > { %2301 = sst [smem:[#allocation20_spill]] %s1689_s14  ;;  %p42_p0 = scmp.ge.s32.totalorder %s40_s18, 2 }
  0x14   : > { %s51_s20 = sadd.s32 1, %s1673_s10  ;;  %p58_p1 = scmp.ne.s32.totalorder %s1673_s10, %s1669_s9 }
  0x15   : > { %p59_p2 = scmp.eq.s32.totalorder %s1693_s15, 0  ;;  %s2350_s18 = smov (%p42_p0, %s40_s18), 0 }
  0x16   : > { %2302 = sst [smem:[#allocation21_spill]] %s2350_s18  ;;  %s2352_s19 = smov (!%p42_p0, %s44_s19), %s1689_s14 }
  0x17   : > { %p1826_p3 = por %p59_p2, %p58_p1  ;;  %p2280_p4 = scmp.ne.s32.totalorder %s1669_s9, %s1665_s30 }
  0x18   : > { %p46_p5 = scmp.ge.s32.totalorder %s2352_s19, 2  ;;  %s172_s22 = ssub.s32 %s1685_s13, %s2350_s18 }
  0x19   : > { %p175_p6 = scmp.eq.s32.totalorder %s172_s22, 0  ;;  %s177_s23 = sadd.s32 1, %s1661_s29 }
  0x1a   : > { %s2354_s19 = smov (%p46_p5, %s2352_s19), 0  ;;  %p184_p7 = scmp.ne.s32.totalorder %s1661_s29, %s1657_s28 }
  0x1b   : > { %2304 = sst [smem:[#allocation22_spill]] %s2354_s19  ;;  %s48_s25 = ssub.s32 %s1689_s14, %s2354_s19 }
  0x1c   : > { %s1838_s24 = scalar_select %p175_p6, %s1661_s29, %s177_s23  }
  0x1d   : > { %p49_p8 = scmp.eq.s32.totalorder %s48_s25, 0  ;;  %p1848_p10 = por %p184_p7, %p59_p2 }
  0x1e   : > { %2305 = sst [smem:[#allocation23_spill]] %s1838_s24  ;;  %p268_p11 = scmp.eq.s32.totalorder %s1809_s16, 3 }
  0x1f   : > { %s1854_s22 = scalar_select %p49_p8, %s1673_s10, %s51_s20  }
  0x20   : > { %p1859_p12 = por %p268_p11, %p58_p1  ;;  %p274_p13 = scmp.eq.s32.totalorder %s1087_s17, 3 }
  0x21   : > { %2307 = sst [smem:[#allocation24_spill]] %s1854_s22  ;;  %p1314_p5 = scmp.lt.s32.totalorder %s1693_s15, 4 }
  0x22   : > { %s2308_s18 = scalar_select %p1859_p12, 1, 0 }
  0x23   : > { %p1866_p0 = por %p274_p13, %p2280_p4  ;;  %s310_s25 = sand.u32 1, %s1693_s15  }
  0x24   : > { %s312_s19 = sand.u32 1, %s1673_s10   ;;  %s1092_s8 = sshll.u32 %s1689_s14, 7 }
  0x25   : > { %s2309_s23 = scalar_select %p1866_p0, 1, 0 }
  0x26   : > { %s1091_s24 = sshll.u32 %s312_s19, 3  ;;  %s2311_s0 = sld [smem:[#allocation26_spill]] }
  0x27   : > { %2310 = sst [smem:[#allocation25_spill]] %s2309_s23  ;;  %s314_s17 = scalar_lea.vmem [#allocation3], %s1091_s24 }
  0x28   : > { %s321_s22 = sshll.u32 %s314_s17, 4  ;;  %p1883_p1 = pnand %p1314_p5, %p1826_p3  ;;  %s1879_s22 = int_to_ptr.vmem [resolvable:$true] %s321_s22 }
  0x29   : > { %p1889_p2 = pnand %p1314_p5, %p1848_p10 }
  0x2a   : > { %p1417_p7 = pneg %p1883_p1 }
  0x2c   : > { %s1877_s20 = scalar_lea.hbm %s2311_s0, %s1092_s8  ;;  %s1893_s8 = scalar_lea.sflag [#allocation4], %s310_s25 }
  0x2d   : > { %s1415_s12 = scalar_lea.hbm %s1877_s20, 128  ;;  %s1420_s24 = scalar_lea.hbm %s2311_s0, 256 }
  0x2e   : > { %p1416_p6 = scmp.ne.s32.totalorder %s1877_s20, %s1415_s12  ;;  %p1421_p10 = scmp.lt.u32.totalorder %s1877_s20, %s2311_s0 }
  0x2f   : > { %p1422_p11 = scmp.lt.u32.totalorder %s1420_s24, %s1415_s12  ;;  %p1424_p5 = scmp.lt.u32.totalorder %s1415_s12, %s1877_s20 }
  0x30   : > { %p1418_p8 = pnand %p1417_p7, %p1416_p6 }
  0x31   : > { %p1423_p13 = por %p1422_p11, %p1421_p10 }
  0x32   : > { %p1419_p3 = pneg %p1418_p8 }
  0x33   : > { %p1425_p9 = por %p1424_p5, %p1423_p13 }
  0x35   : > { %p1426_p4 = pnand %p1425_p9, %p1419_p3 }
  0x37   : > { %1429 = shalt.err (!%p1426_p4)
}
  0x38   : > { %s1430_s25 = scalar_lea.vmem %s1879_s22, 128  ;;  %s1695_s19 = smov [#allocation3]  }
  0x39   : > { %p1431_p6 = scmp.ne.s32.totalorder %s1879_s22, %s1430_s25  ;;  %s1435_s21 = sshll.u32 %s1695_s19, 4  ;;  %s1436_s21 = int_to_ptr.vmem [resolvable:$false] %s1435_s21 }
  0x3a   : > { %s1437_s26 = scalar_lea.vmem %s1436_s21, 256  ;;  %p1438_p12 = scmp.lt.s32.totalorder %s1879_s22, %s1436_s21 }
  0x3b   : > { %p1433_p8 = pnand %p1431_p6, %p1417_p7  ;;  %p1439_p10 = scmp.lt.s32.totalorder %s1437_s26, %s1430_s25 }
  0x3d   : > { %p1434_p0 = pneg %p1433_p8  ;;  %p1440_p11 = por %p1439_p10, %p1438_p12 }
  0x3f   : > { %p1441_p13 = pnand %p1440_p11, %p1434_p0 }
  0x41   : > { %1444 = shalt.err (!%p1441_p13)
}
  0x42   : > { %1299 = dma.hbm_to_vmem [thread:$0]  (!%p1883_p1), %s1877_s20, 128, %s1879_s22, %s1893_s8  }
  0x43   : > { %s348_s12 = sand.u32 1, %s1661_s29   ;;  %s1925_s17 = sshll.u32 %s1685_s13, 11 }
  0x44   : > { %s1922_s24 = sshll.u32 %s348_s12, 7  ;;  %s2314_s5 = sld [smem:[#allocation28_spill]] }
  0x45   : > { %s350_s23 = scalar_lea.vmem [#allocation8], %s1922_s24  ;;  %s1940_s12 = scalar_lea.hbm %s2273_s6, %s1925_s17 }
  0x46   : > { %s359_s26 = sshll.u32 %s350_s23, 4  ;;  %p1946_p9 = pneg %p1889_p2  ;;  %s1934_s26 = int_to_ptr.vmem [resolvable:$true] %s359_s26 }
  0x4a   : > { %s1931_s21 = scalar_lea.hbm %s2314_s5, %s1925_s17  ;;  %s1450_s14 = scalar_lea.hbm %s2314_s5, 4096 }
  0x4b   : > { %s1445_s0 = scalar_lea.hbm %s1931_s21, 2048  ;;  %p1451_p1 = scmp.lt.u32.totalorder %s1931_s21, %s2314_s5 }
  0x4c   : > { %p1446_p4 = scmp.ne.s32.totalorder %s1931_s21, %s1445_s0  ;;  %p1452_p7 = scmp.lt.u32.totalorder %s1450_s14, %s1445_s0 }
  0x4d   : > { %p1454_p5 = scmp.lt.u32.totalorder %s1445_s0, %s1931_s21 }
  0x4e   : > { %p1448_p12 = pnand %p1946_p9, %p1446_p4  ;;  %p1453_p3 = por %p1452_p7, %p1451_p1 }
  0x50   : > { %p1449_p0 = pneg %p1448_p12  ;;  %p1455_p6 = por %p1454_p5, %p1453_p3 }
  0x52   : > { %p1456_p8 = pnand %p1455_p6, %p1449_p0 }
  0x54   : > { %1459 = shalt.err (!%p1456_p8)
}
  0x55   : > { %s1460_s22 = scalar_lea.vmem %s1934_s26, 2048  ;;  %s1696_s20 = smov [#allocation8]  }
  0x56   : > { %p1461_p10 = scmp.ne.s32.totalorder %s1934_s26, %s1460_s22  ;;  %s1465_s19 = sshll.u32 %s1696_s20, 4  ;;  %s1466_s19 = int_to_ptr.vmem [resolvable:$false] %s1465_s19 }
  0x57   : > { %s1467_s10 = scalar_lea.vmem %s1466_s19, 4096  ;;  %p1468_p4 = scmp.lt.s32.totalorder %s1934_s26, %s1466_s19 }
  0x58   : > { %p1463_p11 = pnand %p1461_p10, %p1946_p9  ;;  %p1469_p12 = scmp.lt.s32.totalorder %s1467_s10, %s1460_s22 }
  0x5a   : > { %p1464_p13 = pneg %p1463_p11  ;;  %p1470_p1 = por %p1469_p12, %p1468_p4 }
  0x5c   : > { %p1471_p7 = pnand %p1470_p1, %p1464_p13 }
  0x5e   : > { %1474 = shalt.err (!%p1471_p7)
}
  0x5f   : > { %s2286_s0 = smov 128   ;;  %s1698_s13 = smov 8  }
  0x60   : > { %1302 = dma.hbm_to_vmem [thread:$0]  (!%p1889_p2), %s1931_s21, 2048, %s1934_s26, %s1893_s8, %s2286_s0, %s2286_s0, %s1698_s13  }
  0x61   : > { %s373_s14 = scalar_lea.vmem [#allocation9], %s1922_s24  ;;  %s1475_s22 = scalar_lea.hbm %s1940_s12, 2048 }
  0x62   : > { %s382_s23 = sshll.u32 %s373_s14, 4  ;;  %p1476_p0 = scmp.ne.s32.totalorder %s1940_s12, %s1475_s22  ;;  %s1974_s23 = int_to_ptr.vmem [resolvable:$true] %s382_s23 }
  0x63   : > { %s1480_s10 = scalar_lea.hbm %s2273_s6, 4096  ;;  %p1481_p6 = scmp.lt.u32.totalorder %s1940_s12, %s2273_s6 }
  0x64   : > { %p1478_p3 = pnand %p1476_p0, %p1946_p9  ;;  %p1482_p8 = scmp.lt.u32.totalorder %s1480_s10, %s1475_s22 }
  0x65   : > { %p1484_p11 = scmp.lt.u32.totalorder %s1475_s22, %s1940_s12 }
  0x66   : > { %p1479_p5 = pneg %p1478_p3  ;;  %p1483_p10 = por %p1482_p8, %p1481_p6 }
  0x68   : > { %p1485_p13 = por %p1484_p11, %p1483_p10 }
  0x6a   : > { %p1486_p4 = pnand %p1485_p13, %p1479_p5 }
  0x6c   : > { %1489 = shalt.err (!%p1486_p4)
}
  0x6d   : > { %s1490_s21 = scalar_lea.vmem %s1974_s23, 2048  ;;  %s1699_s26 = smov [#allocation9]  }
  0x6e   : > { %p1491_p12 = scmp.ne.s32.totalorder %s1974_s23, %s1490_s21  ;;  %s1495_s14 = sshll.u32 %s1699_s26, 4  ;;  %s1496_s14 = int_to_ptr.vmem [resolvable:$false] %s1495_s14 }
  0x6f   : > { %s1497_s5 = scalar_lea.vmem %s1496_s14, 4096  ;;  %p1498_p0 = scmp.lt.s32.totalorder %s1974_s23, %s1496_s14 }
  0x70   : > { %p1493_p1 = pnand %p1491_p12, %p1946_p9  ;;  %p1499_p3 = scmp.lt.s32.totalorder %s1497_s5, %s1490_s21 }
  0x72   : > { %p1494_p7 = pneg %p1493_p1  ;;  %p1500_p6 = por %p1499_p3, %p1498_p0 }
  0x74   : > { %p1501_p8 = pnand %p1500_p6, %p1494_p7 }
  0x76   : > { %1504 = shalt.err (!%p1501_p8)
}
  0x77   : > { %1305 = dma.hbm_to_vmem [thread:$0]  (!%p1889_p2), %s1940_s12, 2048, %s1974_s23, %s1893_s8, %s2286_s0, %s2286_s0, %s1698_s13  }
  0x78   : > { %p2288_p5 = scmp.eq.s32.totalorder %s1809_s16, 0  ;;  %p1088_p10 = scmp.ge.s32.totalorder %s1693_s15, 1 }
  0x79   : > { %p281_p11 = scmp.lt.s32.totalorder %s1693_s15, 5  ;;  %p2316_p13 = scmp.ne.s32.totalorder %s1669_s9, %s1665_s30 }
  0x7a   : > { %p2318_p12 = scmp.ne.s32.totalorder %s1657_s28, %s1653_s27  ;;  %s1700_s12 = smov [#allocation6]  }
  0x7b   : > { %p2009_p4 = por %p2288_p5, %p2316_p13  ;;  %p2022_p7 = pnand %p1088_p10, %p281_p11 }
  0x7c   : > { %p2018_p1 = por %p2318_p12, %p2288_p5  ;;  %s296_s23 = sshll.u32 %s1700_s12, 4  ;;  %s2034_s23 = int_to_ptr.vmem [resolvable:$true] %s296_s23 }
  0x7d   : > { %s2317_s29 = scalar_select %p2009_p4, 1, 0 }
  0x7e   : > { %s2319_s22 = scalar_select %p2018_p1, 1, 0 }
  0x7f   : > { %s2320_s20 = scalar_select %p2022_p7, 1, 0 }
  0x80   : > { %p1292_p0 = pneg %p2022_p7  ;;  %s2032_s21 = scalar_lea.hbm %s2274_s7, %s1925_s17 }
  0x81   : > { %s396_s27 = scalar_lea.vmem [#allocation10], %s1922_s24  ;;  %s1505_s5 = scalar_lea.hbm %s2032_s21, 2048 }
  0x82   : > { %s403_s26 = sshll.u32 %s396_s27, 4  ;;  %p2039_p3 = pnand %p1292_p0, %p2288_p5  ;;  %s2043_s26 = int_to_ptr.vmem [resolvable:$true] %s403_s26 }
  0x83   : > { %p1506_p6 = scmp.ne.s32.totalorder %s2032_s21, %s1505_s5  ;;  %s1510_s19 = scalar_lea.hbm %s2274_s7, 4096 }
  0x84   : > { %s2321_s14 = scalar_select %p2039_p3, 1, 0 }
  0x85   : > { %p1508_p8 = pnand %p1506_p6, %p1946_p9  ;;  %p1511_p11 = scmp.lt.u32.totalorder %s2032_s21, %s2274_s7 }
  0x86   : > { %p1512_p13 = scmp.lt.u32.totalorder %s1510_s19, %s1505_s5  ;;  %p1514_p0 = scmp.lt.u32.totalorder %s1505_s5, %s2032_s21 }
  0x87   : > { %p1509_p10 = pneg %p1508_p8 }
  0x88   : > { %p1513_p12 = por %p1512_p13, %p1511_p11 }
  0x8a   : > { %p1515_p5 = por %p1514_p0, %p1513_p12 }
  0x8c   : > { %p1516_p1 = pnand %p1515_p5, %p1509_p10 }
  0x8e   : > { %1519 = shalt.err (!%p1516_p1)
}
  0x8f   : > { %s1520_s24 = scalar_lea.vmem %s2043_s26, 2048  ;;  %s1701_s27 = smov [#allocation10]  }
  0x90   : > { %p1521_p6 = scmp.ne.s32.totalorder %s2043_s26, %s1520_s24  ;;  %s1525_s17 = sshll.u32 %s1701_s27, 4  ;;  %s1526_s17 = int_to_ptr.vmem [resolvable:$false] %s1525_s17 }
  0x91   : > { %s1527_s0 = scalar_lea.vmem %s1526_s17, 4096  ;;  %p1528_p7 = scmp.lt.s32.totalorder %s2043_s26, %s1526_s17 }
  0x92   : > { %p1523_p8 = pnand %p1521_p6, %p1946_p9  ;;  %p1529_p3 = scmp.lt.s32.totalorder %s1527_s0, %s1520_s24 }
  0x94   : > { %p1524_p4 = pneg %p1523_p8  ;;  %p1530_p11 = por %p1529_p3, %p1528_p7 }
  0x96   : > { %p1531_p13 = pnand %p1530_p11, %p1524_p4 }
  0x98   : > { %1534 = shalt.err (!%p1531_p13)
}
  0x99   : > { %s2322_s5 = smov 128   ;;  %s1535_s19 = scalar_lea.hbm %s2269_s2, 2048 }
  0x9a   : > { %1308 = dma.hbm_to_vmem [thread:$0]  (!%p1889_p2), %s2032_s21, 2048, %s2043_s26, %s1893_s8, %s2322_s5, %s2322_s5, %s1698_s13  }
  0x9b   : > { %p1536_p9 = scmp.ne.s32.totalorder %s2269_s2, %s1535_s19  ;;  %p2323_p5 = scmp.ne.s32.totalorder %s2321_s14, 0 }
  0x9c   : > { %p1542_p3 = scmp.lt.u32.totalorder %s1535_s19, %s2269_s2 }
  0x9d   : > { %p1537_p4 = pneg %p2323_p5 }
  0x9f   : > { %p1538_p1 = pnand %p1537_p4, %p1536_p9 }
  0xa1   : > { %p1539_p7 = pneg %p1538_p1 }
  0xa3   : > { %p1544_p10 = pnand %p1542_p3, %p1539_p7 }
  0xa5   : > { %1547 = shalt.err (!%p1544_p10)
}
  0xa6   : > { %s1548_s8 = scalar_lea.vmem %s2034_s23, 2048  ;;  %p1556_p6 = scmp.lt.s32.totalorder %s2034_s23, %s2034_s23 }
  0xa7   : > { %p1549_p2 = scmp.ne.s32.totalorder %s2034_s23, %s1548_s8  ;;  %p1557_p8 = scmp.lt.s32.totalorder %s1548_s8, %s1548_s8 }
  0xa9   : > { %p1551_p12 = pnand %p1549_p2, %p1537_p4  ;;  %p1558_p11 = por %p1557_p8, %p1556_p6 }
  0xab   : > { %p1552_p0 = pneg %p1551_p12 }
  0xad   : > { %p1559_p13 = pnand %p1558_p11, %p1552_p0 }
  0xaf   : > { %1562 = shalt.err (!%p1559_p13)
}
  0xb0   : > { %1295 = dma.hbm_to_vmem [thread:$0]  (!%p2323_p5), %s2269_s2, 2048, %s2034_s23, [#allocation7], %s2322_s5, %s2322_s5, %s1698_s13  }
  0xb1   : > { %p2324_p9 = scmp.ne.s32.totalorder %s2320_s20, 0 }
  0xb2   : > { %s417_s17 = sand.u32 (!%p2324_p9), 1, %s1809_s16   ;;  %s419_s0 = sand.u32 (!%p2324_p9), 1, %s1669_s9  }
  0xb3   : > { %415 = sbr.rel (%p2324_p9) target bundleno = 991 (0x3df), region = 52  ;;  %s2100_s25 = sshll.u32 (!%p2324_p9), %s419_s0, 3 }
  0xb4   : > { %s418_s14 = scalar_lea.sflag (!%p2324_p9), [#allocation4], %s417_s17  ;;  %s421_s12 = scalar_lea.vmem (!%p2324_p9), [#allocation3], %s2100_s25 }
  0xb5   : > { %p2325_p4 = scmp.ne.s32.totalorder (!%p2324_p9), %s2317_s29, 0 }
  0xba   : > { %1636 = dma.done.wait (%p2325_p4), %s418_s14, 128  }
  0xbb   : > { %1638 = vsyncadd (%p2325_p4), %s418_s14, 4294967168  ;;  %p2326_p5 = scmp.eq.s32.totalorder %s1809_s16, 0 }
  0xbd   : > { %1640 = dma.done.wait (%p2326_p5), [#allocation7], 2048   ;;  %p2327_p1 = pmov %p2326_p5 }
  0xbe   : > { %s432_s13 = sand.u32 1, %s1657_s28   ;;  %p2328_p7 = scmp.ne.s32.totalorder %s2319_s22, 0 }
  0xbf   : > { %1642 = vsyncadd (%p2327_p1), [#allocation7], 4294965248  ;;  %s1105_s20 = sshll.u32 %s432_s13, 7 }
  0xc0   : > { %s2112_s23 = scalar_lea.vmem [#allocation8], %s1105_s20 }
  0xc1   : > { %1644 = dma.done.wait (%p2328_p7), %s418_s14, 6144  }
  0xc2   : > { %1646 = vsyncadd (%p2328_p7), %s418_s14, 4294961152  ;;  %p512_p3 = scmp.lt.s32.totalorder %s1677_s11, 1  ;;  %p527_p10 = scmp.eq.s32.totalorder %s1677_s11, 0 }
  0xc3   : > { %s2131_s22 = scalar_lea.vmem [#allocation9], %s1105_s20  ;;  %s2133_s24 = scalar_lea.vmem [#allocation10], %s1105_s20  ;;  %v543_v0 = vld [vmem:[#allocation6] sm:$0xff] (%p527_p10)  ;;  %v544_v1 = vld [vmem:[#allocation6 + $0x8] sm:$0xff] (%p527_p10)  ;;  %v545_v2 = vld [vmem:[#allocation6 + $0x10] sm:$0xff] (%p527_p10)  ;;  %v1702_v3 = vmov (%p527_p10), 0.0  }
  0xc4   : > { %s2121_s29 = scalar_select %p512_p3, %s1677_s11, 1 }
  0xc5   : > { %s511_s8 = scalar_lea.vmem [#allocation11], %s2100_s25  ;;  %532 = sbr.rel (!%p527_p10) target bundleno = 445 (0x1bd), region = 76  ;;  %1167 = vmatprep.subr.bf16.mxu0 (%p527_p10), %v1702_v3  ;;  %v559_v4 = vpack.c.bf16 (%p527_p10), %v544_v1, %v543_v0  ;;  %v546_v5 = vld [vmem:[#allocation6 + $0x18] sm:$0xff] (%p527_p10)  ;;  %vm1703_vm0 = vmmov (%p527_p10), 0   ;;  %v547_v7 = vld [vmem:[#allocation6 + $0x20] sm:$0xff] (%p527_p10)  ;;  %v548_v8 = vld [vmem:[#allocation6 + $0x28] sm:$0xff] (%p527_p10) }
  0xc6   : > { %s517_s19 = scalar_lea.vmem %s2270_s3, %s2121_s29  ;;  %s523_s1 = scalar_lea.vmem %s2271_s4, %s2121_s29  ;;  %1183 = vmatprep.mubr.msk.bf16.mxu0 (%p527_p10), %vm1703_vm0, %v1702_v3  ;;  %v560_v6 = vpack.c.bf16 (%p527_p10), %v546_v5, %v545_v2  ;;  %v561_v9 = vpack.c.bf16 (%p527_p10), %v548_v8, %v547_v7  ;;  %v549_v10 = vld [vmem:[#allocation6 + $0x30] sm:$0xff] (%p527_p10)  ;;  %v550_v11 = vld [vmem:[#allocation6 + $0x38] sm:$0xff] (%p527_p10)  ;;  %v551_v13 = vld [vmem:[#allocation6 + $0x40] sm:$0xff] (%p527_p10) }
  0xc7   : > { %1168 = vmatpush3.bf16.msra.mxu0 (%p527_p10), %v559_v4  ;;  %v562_v12 = vpack.c.bf16 (%p527_p10), %v550_v11, %v549_v10  ;;  %v552_v14 = vld [vmem:[#allocation6 + $0x48] sm:$0xff] (%p527_p10)  ;;  %v553_v16 = vld [vmem:[#allocation6 + $0x50] sm:$0xff] (%p527_p10)  ;;  %v554_v17 = vld [vmem:[#allocation6 + $0x58] sm:$0xff] (%p527_p10)  ;;  %s2329_s17 = sld [smem:[#allocation27_spill]] (%p527_p10) }
  0xc8   : > { %1169 = vmatprep.subr.bf16.mxu0 (%p527_p10), %v1702_v3  ;;  %v563_v15 = vpack.c.bf16 (%p527_p10), %v552_v14, %v551_v13  ;;  %v564_v18 = vpack.c.bf16 (%p527_p10), %v554_v17, %v553_v16  ;;  %v555_v19 = vld [vmem:[#allocation6 + $0x60] sm:$0xff] (%p527_p10)  ;;  %v556_v20 = vld [vmem:[#allocation6 + $0x68] sm:$0xff] (%p527_p10)  ;;  %v533_v22 = vld [vmem:[%s421_s12] sm:$0xff] (%p527_p10) }
  0xc9   : > { %v565_v21 = vpack.c.bf16 (%p527_p10), %v556_v20, %v555_v19  ;;  %v557_v24 = vld [vmem:[#allocation6 + $0x70] sm:$0xff] (%p527_p10)  ;;  %v558_v25 = vld [vmem:[#allocation6 + $0x78] sm:$0xff] (%p527_p10) }
  0xca   : > { %v566_v27 = vpack.c.bf16 (%p527_p10), %v558_v25, %v557_v24 }
  0xcb   : > { %1170 = vmatpush3.bf16.msra.mxu0 (%p527_p10), %v560_v6 }
  0xcc   : > { %1171 = vmatprep.subr.bf16.mxu0 %v1702_v3 }
  0xcd   : > { %v1110_v23 = vld [vmem:[%s2329_s17] ss:$0 sm:$0xff] }
  0xce   : > { %v541_v26 = vsub.f32 %v533_v22, %v1110_v23 }
  0xcf   : > { %1172 = vmatpush3.bf16.msra.mxu0 %v561_v9 }
  0xd0   : > { %1173 = vmatprep.subr.bf16.mxu0 %v1702_v3  ;;  %v542_v28 = vpack.c.bf16 %v541_v26, %v541_v26 }
  0xd3   : > { %1174 = vmatpush3.bf16.msra.mxu0 %v562_v12 }
  0xd4   : > { %1175 = vmatprep.subr.bf16.mxu0 %v1702_v3 }
  0xd7   : > { %1176 = vmatpush3.bf16.msra.mxu0 %v563_v15 }
  0xd8   : > { %1177 = vmatprep.subr.bf16.mxu0 %v1702_v3 }
  0xdb   : > { %1178 = vmatpush3.bf16.msra.mxu0 %v564_v18 }
  0xdc   : > { %1179 = vmatprep.subr.bf16.mxu0 %v1702_v3 }
  0xdf   : > { %1180 = vmatpush3.bf16.msra.mxu0 %v565_v21 }
  0xe0   : > { %1181 = vmatprep.subr.bf16.mxu0 %v1702_v3 }
  0xe3   : > { %1182 = vmatpush3.bf16.msra.mxu0 %v566_v27 }
  0xe6   : > { %1184 = vmatmul.mubr.bf16.vlgmr.msra.gmra.mrb[0].mxu0 %v542_v28 }
 0x1b9   : > { %v601_v29 = vpop.f32.mrb[0].mxu0 }
 0x1ba   : > { %607 = vst [vmem:[#allocation2] sm:$0xff] %v601_v29  ;;  %v1185_v30 = vpop.f32.mrb[1].mxu0 }
 0x1bb   : > { %v604_v31 = vpop.f32.mrb[2].mxu0 }
 0x1bc   : > { %v1186_v32 = vpop.f32.mrb[3].mxu0 }
 0x1bd PF: > { %v664_v33 = vld [vmem:[%s2133_s24] sm:$0xff]  ;;  %v665_v34 = vld [vmem:[%s2133_s24 + $0x8] sm:$0xff]  ;;  %v666_v35 = vld [vmem:[%s2133_s24 + $0x10] sm:$0xff]  ;;  %vm1705_vm1 = vmmov 0   ;;  %s2330_s14 = sld [smem:[#allocation18_spill]]  ;;  %p879_p2 = scmp.eq.s32.totalorder %s1677_s11, 1 }
 0x1be   : > { %v680_v36 = vpack.c.bf16 %v665_v34, %v664_v33  ;;  %v667_v37 = vld [vmem:[%s2133_s24 + $0x18] sm:$0xff]  ;;  %v668_v39 = vld [vmem:[%s2133_s24 + $0x20] sm:$0xff]  ;;  %v669_v40 = vld [vmem:[%s2133_s24 + $0x28] sm:$0xff] }
 0x1bf   : > { %v681_v38 = vpack.c.bf16 %v667_v37, %v666_v35  ;;  %v682_v41 = vpack.c.bf16 %v669_v40, %v668_v39  ;;  %v670_v42 = vld [vmem:[%s2133_s24 + $0x30] sm:$0xff]  ;;  %v608_v43 = vld [vmem:[%s2112_s23] sm:$0xff]  ;;  %v609_v44 = vld [vmem:[%s2112_s23 + $0x8] sm:$0xff] }
 0x1c0   : > { %1187 = vmatprep.subr.bf16.mxu0 %v680_v36  ;;  %v671_v45 = vld [vmem:[%s2133_s24 + $0x38] sm:$0xff]  ;;  %v624_v46 = vld [vmem:[%s2131_s22] sm:$0xff]  ;;  %v625_v47 = vld [vmem:[%s2131_s22 + $0x8] sm:$0xff] }
 0x1c1   : > { %1188 = vmatpush3.bf16.msra.mxu0 %v680_v36  ;;  %v640_v48 = vsub.f32 %v608_v43, %v624_v46  ;;  %v641_v49 = vsub.f32 %v609_v44, %v625_v47  ;;  %v683_v50 = vpack.c.bf16 %v671_v45, %v670_v42  ;;  %v672_v52 = vld [vmem:[%s2133_s24 + $0x40] sm:$0xff]  ;;  %v673_v53 = vld [vmem:[%s2133_s24 + $0x48] sm:$0xff]  ;;  %v674_v55 = vld [vmem:[%s2133_s24 + $0x50] sm:$0xff] }
 0x1c2   : > { %1189 = vmatprep.subr.bf16.mxu0 %v681_v38  ;;  %v684_v54 = vpack.c.bf16 %v673_v53, %v672_v52  ;;  %v675_v56 = vld [vmem:[%s2133_s24 + $0x58] sm:$0xff]  ;;  %v676_v58 = vld [vmem:[%s2133_s24 + $0x60] sm:$0xff]  ;;  %v677_v59 = vld [vmem:[%s2133_s24 + $0x68] sm:$0xff] }
 0x1c3   : > { %v656_v51 = vpack.c.bf16 %v641_v49, %v640_v48  ;;  %v685_v57 = vpack.c.bf16 %v675_v56, %v674_v55  ;;  %v686_v60 = vpack.c.bf16 %v677_v59, %v676_v58  ;;  %v678_v61 = vld [vmem:[%s2133_s24 + $0x70] sm:$0xff]  ;;  %v679_v62 = vld [vmem:[%s2133_s24 + $0x78] sm:$0xff]  ;;  %v612_v3 = vld [vmem:[%s2112_s23 + $0x20] sm:$0xff]  ;;  %v1704_v49 = vmov 0.0|0.0   ;;  %s1111_s12 = sshll.u32 %s2330_s14, 3 }
 0x1c4   : > { %v610_v63 = vld [vmem:[%s2112_s23 + $0x10] sm:$0xff]  ;;  %v611_v0 = vld [vmem:[%s2112_s23 + $0x18] sm:$0xff]  ;;  %v687_v4 = vpack.c.bf16 %v679_v62, %v678_v61  ;;  %v613_v5 = vld [vmem:[%s2112_s23 + $0x28] sm:$0xff]  ;;  %1254 = vmatprep.subr.bf16.mxu1 %v1704_v49 }
 0x1c5   : > { %1190 = vmatpush3.bf16.msra.mxu0 %v681_v38  ;;  %1203 = vmatprep.mubr.bf16.mxu0 %v656_v51  ;;  %v626_v1 = vld [vmem:[%s2131_s22 + $0x10] sm:$0xff]  ;;  %v627_v2 = vld [vmem:[%s2131_s22 + $0x18] sm:$0xff]  ;;  %v628_v6 = vld [vmem:[%s2131_s22 + $0x20] sm:$0xff] }
 0x1c6   : > { %1191 = vmatprep.subr.bf16.mxu0 %v682_v41  ;;  %v629_v7 = vld [vmem:[%s2131_s22 + $0x28] sm:$0xff]  ;;  %v642_v8 = vsub.f32 %v610_v63, %v626_v1  ;;  %v643_v9 = vsub.f32 %v611_v0, %v627_v2  ;;  %v644_v10 = vsub.f32 %v612_v3, %v628_v6  ;;  %v614_v13 = vld [vmem:[%s2112_s23 + $0x30] sm:$0xff]  ;;  %v615_v14 = vld [vmem:[%s2112_s23 + $0x38] sm:$0xff]  ;;  %v786_v63 = vlaneseq }
 0x1c7   : > { %v645_v11 = vsub.f32 %v613_v5, %v629_v7  ;;  %v630_v16 = vld [vmem:[%s2131_s22 + $0x30] sm:$0xff]  ;;  %v631_v17 = vld [vmem:[%s2131_s22 + $0x38] sm:$0xff]  ;;  %v616_v18 = vld [vmem:[%s2112_s23 + $0x40] sm:$0xff]  ;;  %v788_v7 = vstv %s1111_s12 }
 0x1c8   : > { %v657_v12 = vpack.c.bf16 %v643_v9, %v642_v8  ;;  %v617_v19 = vld [vmem:[%s2112_s23 + $0x48] sm:$0xff]  ;;  %v632_v20 = vld [vmem:[%s2131_s22 + $0x40] sm:$0xff]  ;;  %v646_v22 = vsub.f32 %v614_v13, %v630_v16  ;;  %v647_v23 = vsub.f32 %v615_v14, %v631_v17  ;;  %v618_v27 = vld [vmem:[%s2112_s23 + $0x50] sm:$0xff]  ;;  %v787_v5 = vshrl.u32 %v786_v63, 7 }
 0x1c9   : > { %1192 = vmatpush3.bf16.msra.mxu0 %v682_v41  ;;  %v658_v15 = vpack.c.bf16 %v645_v11, %v644_v10  ;;  %v633_v21 = vld [vmem:[%s2131_s22 + $0x48] sm:$0xff]  ;;  %v648_v24 = vsub.f32 %v616_v18, %v632_v20  ;;  %v619_v28 = vld [vmem:[%s2112_s23 + $0x58] sm:$0xff]  ;;  %v634_v30 = vld [vmem:[%s2131_s22 + $0x50] sm:$0xff] }
 0x1ca   : > { %1193 = vmatprep.subr.bf16.mxu0 %v683_v50  ;;  %v649_v25 = vsub.f32 %v617_v19, %v633_v21  ;;  %v659_v26 = vpack.c.bf16 %v647_v23, %v646_v22  ;;  %v635_v31 = vld [vmem:[%s2131_s22 + $0x58] sm:$0xff]  ;;  %v620_v32 = vld [vmem:[%s2112_s23 + $0x60] sm:$0xff]  ;;  %v621_v33 = vld [vmem:[%s2112_s23 + $0x68] sm:$0xff]  ;;  %v650_v36 = vsub.f32 %v618_v27, %v634_v30  ;;  %v789_v8 = vadd.s32 %v788_v7, %v787_v5 }
 0x1cb   : > { %v636_v34 = vld [vmem:[%s2131_s22 + $0x60] sm:$0xff]  ;;  %v637_v35 = vld [vmem:[%s2131_s22 + $0x68] sm:$0xff]  ;;  %v651_v37 = vsub.f32 %v619_v28, %v635_v31  ;;  %v622_v41 = vld [vmem:[%s2112_s23 + $0x70] sm:$0xff] }
 0x1cc   : > { %v660_v29 = vpack.c.bf16 %v649_v25, %v648_v24  ;;  %v652_v38 = vsub.f32 %v620_v32, %v636_v34  ;;  %v653_v39 = vsub.f32 %v621_v33, %v637_v35  ;;  %v623_v43 = vld [vmem:[%s2112_s23 + $0x78] sm:$0xff]  ;;  %v638_v44 = vld [vmem:[%s2131_s22 + $0x70] sm:$0xff]  ;;  %v1112_v10 = vld [vmem:[%s517_s19] ss:$0 sm:$0xff] }
 0x1cd   : > { %1194 = vmatpush3.bf16.msra.mxu0 %v683_v50  ;;  %v661_v40 = vpack.c.bf16 %v651_v37, %v650_v36  ;;  %v639_v45 = vld [vmem:[%s2131_s22 + $0x78] sm:$0xff]  ;;  %v654_v46 = vsub.f32 %v622_v41, %v638_v44  ;;  %v1706_v50 = vmov 0.0   ;;  %vm795_vm2 = vcmp.eq.s32.totalorder %v789_v8, %v1112_v10  ;;  %v1114_v17 = vld [vmem:[%s523_s1] ss:$0 sm:$0xff] }
 0x1ce   : > { %1195 = vmatprep.subr.bf16.mxu0 %v684_v54  ;;  %v662_v42 = vpack.c.bf16 %v653_v39, %v652_v38  ;;  %v655_v47 = vsub.f32 %v623_v43, %v639_v45  ;;  %1251 = vmatprep.mubr.msk.f32.mxu1 %vm1705_vm1, %v1706_v50  ;;  %v1113_v16 = vsel %vm795_vm2, 1.0, %v1706_v50  ;;  %v806_v19 = vld [vmem:[#allocation2] sm:$0xff] }
 0x1cf   : > { %v805_v18 = vmul.f32 %v1114_v17, %v1113_v16 }
 0x1d0   : > { %v663_v48 = vpack.c.bf16 %v655_v47, %v654_v46 }
 0x1d1   : > { %1196 = vmatpush3.bf16.msra.mxu0 %v684_v54 }
 0x1d2   : > { %1197 = vmatprep.subr.bf16.mxu0 %v685_v57 }
 0x1d5   : > { %1198 = vmatpush3.bf16.msra.mxu0 %v685_v57 }
 0x1d6   : > { %1199 = vmatprep.subr.bf16.mxu0 %v686_v60 }
 0x1d9   : > { %1200 = vmatpush3.bf16.msra.mxu0 %v686_v60 }
 0x1da   : > { %1201 = vmatprep.subr.bf16.mxu0 %v687_v4 }
 0x1dd   : > { %1202 = vmatpush3.bf16.msra.mxu0 %v687_v4 }
 0x1e0   : > { %1204 = vmatmul.mubr.bf16.vlgmr.msra.gmra.mrb[0].mxu0 %v657_v12 }
 0x1e1   : > { %1207 = vmatprep.mubr.bf16.mxu0 %v658_v15 }
 0x1e8   : > { %1208 = vmatmul.mubr.bf16.gmra.mrb[4].mxu0 %v659_v26 }
 0x1e9   : > { %1211 = vmatprep.mubr.bf16.mxu0 %v660_v29 }
 0x1f0   : > { %1212 = vmatmul.mubr.bf16.gmra.mrb[8].mxu0 %v661_v40 }
 0x1f1   : > { %1215 = vmatprep.mubr.bf16.mxu0 %v662_v42 }
 0x1f8   : > { %1216 = vmatmul.mubr.bf16.gmra.mrb[12].mxu0 %v663_v48 }
 0x2b3   : > { %v1205_v51 = vpop.f32.mrb[0].mxu0 }
 0x2b4   : > { %v722_v52 = vpop.f32.mrb[1].mxu0 }
 0x2b5   : > { %v1206_v53 = vpop.f32.mrb[2].mxu0 }
 0x2b6   : > { %v1258_v54 = vpack.c.bf16 %v1206_v53, %v1205_v51  ;;  %v725_v55 = vpop.f32.mrb[3].mxu0 }
 0x2b7   : > { %v1255_v56 = vpack.c.bf16 %v725_v55, %v722_v52 }
 0x2b9   : > { %1256 = vmatpush3.bf16.msra.mxu1 %v1255_v56 }
 0x2ba   : > { %1257 = vmatprep.subr.bf16.mxu1 %v1704_v49 }
 0x2bb   : > { %v1209_v57 = vpop.f32.mrb[4].mxu0 }
 0x2bc   : > { %v738_v58 = vpop.f32.mrb[5].mxu0 }
 0x2bd   : > { %v1210_v59 = vpop.f32.mrb[6].mxu0  ;;  %1259 = vmatpush3.bf16.msra.mxu1 %v1258_v54 }
 0x2be   : > { %v1264_v60 = vpack.c.bf16 %v1210_v59, %v1209_v57  ;;  %v741_v61 = vpop.f32.mrb[7].mxu0  ;;  %1260 = vmatprep.subr.bf16.mxu1 %v1704_v49 }
 0x2bf   : > { %v1261_v62 = vpack.c.bf16 %v741_v61, %v738_v58 }
 0x2c1   : > { %1262 = vmatpush3.bf16.msra.mxu1 %v1261_v62 }
 0x2c2   : > { %1263 = vmatprep.subr.bf16.mxu1 %v1704_v49 }
 0x2c3   : > { %v1213_v0 = vpop.f32.mrb[8].mxu0 }
 0x2c4   : > { %v754_v1 = vpop.f32.mrb[9].mxu0 }
 0x2c5   : > { %v1214_v2 = vpop.f32.mrb[10].mxu0  ;;  %1265 = vmatpush3.bf16.msra.mxu1 %v1264_v60 }
 0x2c6   : > { %v1270_v3 = vpack.c.bf16 %v1214_v2, %v1213_v0  ;;  %v757_v4 = vpop.f32.mrb[11].mxu0  ;;  %1266 = vmatprep.subr.bf16.mxu1 %v1704_v49 }
 0x2c7   : > { %v1267_v6 = vpack.c.bf16 %v757_v4, %v754_v1 }
 0x2c9   : > { %1268 = vmatpush3.bf16.msra.mxu1 %v1267_v6 }
 0x2ca   : > { %1269 = vmatprep.subr.bf16.mxu1 %v1704_v49 }
 0x2cb   : > { %v1217_v9 = vpop.f32.mrb[12].mxu0 }
 0x2cc   : > { %v770_v11 = vpop.f32.mrb[13].mxu0 }
 0x2cd   : > { %v1218_v12 = vpop.f32.mrb[14].mxu0  ;;  %1271 = vmatpush3.bf16.msra.mxu1 %v1270_v3 }
 0x2ce   : > { %v1276_v13 = vpack.c.bf16 %v1218_v12, %v1217_v9  ;;  %v773_v14 = vpop.f32.mrb[15].mxu0  ;;  %1272 = vmatprep.subr.bf16.mxu1 %v1704_v49 }
 0x2cf   : > { %v1273_v15 = vpack.c.bf16 %v773_v14, %v770_v11 }
 0x2d1   : > { %1274 = vmatpush3.bf16.msra.mxu1 %v1273_v15 }
 0x2d2   : > { %1275 = vmatprep.subr.bf16.mxu1 %v1704_v49 }
 0x2d5   : > { %1277 = vmatpush3.bf16.msra.mxu1 %v1276_v13 }
 0x2d8   : > { %1252 = vmatmul.mubr.f32.vlgmr.msra.gmra.mrb[0].mxu1 %v805_v18 }
 0x3a8   : > { %883 = sbr.rel (!%p879_p2) target bundleno = 964 (0x3c4), region = 80 }
 0x3ab   : > { %v873_v20 = vpop.f32.mrb[0].mxu1 }
 0x3ac   : > { %v877_v21 = vadd.f32 %v873_v20, %v806_v19  ;;  %v1253_v22 = vpop.f32.mrb[1].mxu1 }
 0x3ae   : > { %878 = vst [vmem:[#allocation2] sm:$0xff] %v877_v21 }
 0x3b5   : > { %v884_v23 = vld [vmem:[#allocation2] sm:$0xff] }
 0x3b6   : > { %v885_v24 = vmul.f32 0.33333334, %v884_v23 }
 0x3b8   : > { %1413 = vtanh.f32 %v885_v24 }
 0x3c2   : > { %v1414_v25 = vpop.eup %1413 }
 0x3c3   : > { %887 = vst [vmem:[%s511_s8] sm:$0xff] %v1414_v25 }
 0x3c4 PF: > { %s2331_s29 = sld [smem:[#allocation18_spill]]  ;;  %s2332_s10 = sld [smem:[#allocation29_spill]] }
 0x3c5   : > { %s902_s22 = sshll.u32 %s511_s8, 4  ;;  %s889_s24 = scalar_lea.sflag [#allocation5], %s419_s0  ;;  %s903_s22 = int_to_ptr.vmem [resolvable:$true] %s902_s22 }
 0x3c6   : > { %s1563_s21 = scalar_lea.vmem %s903_s22, 128  ;;  %p2334_p0 = scmp.ne.s32.totalorder %s2308_s18, 0 }
 0x3c7   : > { %p1564_p12 = scmp.ne.s32.totalorder %s903_s22, %s1563_s21  ;;  %s1707_s26 = smov [#allocation11]  }
 0x3c8   : > { %s1567_s17 = sshll.u32 %s1707_s26, 4  ;;  %s1568_s17 = int_to_ptr.vmem [resolvable:$false] %s1567_s17 }
 0x3c9   : > { %p1565_p6 = pnand %p1564_p12, %p2334_p0  ;;  %s1569_s14 = scalar_lea.vmem %s1568_s17, 256 }
 0x3ca   : > { %s1117_s5 = sshll.u32 %s2331_s29, 7  ;;  %s2333_s1 = smov %s2332_s10 }
 0x3cb   : > { %s2207_s27 = scalar_lea.hbm %s2332_s10, %s1117_s5  ;;  %p1566_p8 = pneg %p1565_p6 }
 0x3cc   : > { %p1570_p11 = scmp.lt.s32.totalorder %s903_s22, %s1568_s17  ;;  %p1571_p13 = scmp.lt.s32.totalorder %s1569_s14, %s1563_s21 }
 0x3ce   : > { %p1572_p9 = por %p1571_p13, %p1570_p11 }
 0x3d0   : > { %p1573_p4 = pnand %p1572_p9, %p1566_p8 }
 0x3d2   : > { %1576 = shalt.err (!%p1573_p4)
}
 0x3d3   : > { %s1577_s0 = scalar_lea.hbm %s2207_s27, 128  ;;  %s1581_s12 = scalar_lea.hbm %s2333_s1, 256 }
 0x3d4   : > { %p1578_p5 = scmp.ne.s32.totalorder %s2207_s27, %s1577_s0  ;;  %p1582_p3 = scmp.lt.u32.totalorder %s2207_s27, %s2333_s1 }
 0x3d5   : > { %p1583_p10 = scmp.lt.u32.totalorder %s1581_s12, %s1577_s0  ;;  %p1585_p12 = scmp.lt.u32.totalorder %s1577_s0, %s2207_s27 }
 0x3d6   : > { %p1579_p1 = pnand %p1578_p5, %p2334_p0 }
 0x3d7   : > { %p1584_p2 = por %p1583_p10, %p1582_p3 }
 0x3d8   : > { %p1580_p7 = pneg %p1579_p1 }
 0x3d9   : > { %p1586_p6 = por %p1585_p12, %p1584_p2 }
 0x3db   : > { %p1587_p8 = pnand %p1586_p6, %p1580_p7 }
 0x3dd   : > { %1590 = shalt.err (!%p1587_p8)
}
 0x3de   : > { %1290 = dma.vmem_to_hbm [thread:$0]  (%p2334_p0), %s903_s22, 128, %s2207_s27, %s889_s24  }
 0x3df PF: > { %s2335_s23 = sld [smem:[#allocation25_spill]]  ;;  %p1316_p11 = scmp.ge.s32.totalorder %s1693_s15, 2 }
 0x3e0   : > { %s914_s16 = sand.u32 1, %s1665_s30  }
 0x3e1   : > { %s915_s29 = scalar_lea.sflag [#allocation5], %s914_s16 }
 0x3e5   : > { %p2336_p13 = scmp.ne.s32.totalorder %s2335_s23, 0 }
 0x3e7   : > { %p1310_p9 = pnand %p1316_p11, %p2336_p13 }
 0x3e9   : > { %1648 = dma.done.wait (!%p1310_p9), %s915_s29, 128  }
 0x3ea   : > { %1650 = vsyncadd (!%p1310_p9), %s915_s29, 4294967168  ;;  %s25_s15 = sadd.s32 1, %s1693_s15   ;;  %s2337_s5 = sld [smem:[#allocation16_spill]] }
 0x3eb   : > { %p22_p4 = scmp.ge.s32.totalorder %s25_s15, 6   ;;  %s2338_s29 = sld [smem:[#allocation23_spill]] }
 0x3ec   : > { %s2339_s18 = sld [smem:[#allocation17_spill]]  ;;  %s2340_s10 = sld [smem:[#allocation24_spill]] }
 0x3ed   : > { %s2341_s11 = sld [smem:[#allocation19_spill]]  ;;  %s2342_s12 = sld [smem:[#allocation20_spill]] }
 0x3ee   : > { %s2343_s13 = sld [smem:[#allocation21_spill]]  ;;  %s2344_s14 = sld [smem:[#allocation22_spill]] }
 0x3ef   : > { %s2345_s27 = smov %s1657_s28  ;;  %s2347_s30 = smov %s1669_s9 }
 0x3f0   : > { %s2346_s28 = smov %s2337_s5  ;;  %24 = sbr.rel (!%p22_p4) target bundleno = 15 (0xf), region = 148 }
 0x3f2   : > { %s2348_s9 = smov %s2339_s18 }
 0x3f7   :  { %920 = vsyncpa [#allocation4], 1 }
 0x3f8   :  { %922 = vsyncpa [#allocation4 + $0x1], 1 }
 0x3f9   :  { %923 = vsyncpa [#allocation7], 1 }
 0x3fa   :  { %924 = vsyncpa [#allocation5], 1 }
 0x3fb   :  { %926 = vsyncpa [#allocation5 + $0x1], 1 }

</bundles_post_ra>
